<compile_context>
chip_gen: v7x
topology: tpu7x:2x2x1
jax: 0.10.0
libtpu: 0.0.40
codegen_flags: <defaults>
</compile_context>

<pallas_src>
import jax
import jax.numpy as jnp
from jax.experimental import pallas as pl
from jax.experimental.pallas import tpu as pltpu


def _round_up(x, m):
    return (x + m - 1) // m * m


def mm_classifier_kernel(x_ref, w1_ref, b1_ref, w2_ref, b2_ref, o_ref):
    # fc1: one MXU matmul on the (pre-concatenated) bf16 input, f32 accumulate.
    h = jnp.dot(x_ref[...], w1_ref[...], preferred_element_type=jnp.float32)
    h = h + b1_ref[...]
    h = jnp.maximum(h, 0.0)          # ReLU in f32 (VPU; v5e-safe)
    # dropout: identity in eval mode.
    # fc2 (bf16 operands, f32 accumulate) + bias.
    logits = jnp.dot(h.astype(w2_ref.dtype), w2_ref[...],
                     preferred_element_type=jnp.float32)
    logits = logits + b2_ref[...]
    # sigmoid: exp (EUP) + approximate reciprocal (EUP) keeps the VPU slot free.
    o_ref[...] = pl.reciprocal(1.0 + jnp.exp(-logits), approx=True)


def multimodal_classifier_forward(text_emb, image_emb, caption_emb, params,
                                  *, tile_b=512):
    """Fused fc1 -> ReLU -> fc2 -> sigmoid as a single batch-gridded Pallas call."""
    w1, b1, w2, b2 = params          # w1: [in, hidden], w2: [hidden, out]
    batch = text_emb.shape[0]
    in_dim, hidden = w1.shape
    out_dim = w2.shape[1]

    # Fold the concat into a single matmul operand (no in-kernel concat needed).
    combined = jnp.concatenate([text_emb, image_emb, caption_emb], axis=1)
    assert combined.shape[1] == in_dim

    # Lane/sublane-dense padding:
    #   output columns -> multiple of 128 (unmasked vst),
    #   batch          -> multiple of the batch tile (tile multiple of 16 covers
    #                     both the f32 (8) and bf16 (16) sublane requirements).
    out_pad = _round_up(out_dim, 128)
    tile_b = min(tile_b, _round_up(batch, 16))
    b_pad = _round_up(batch, tile_b)

    x = jnp.pad(combined, ((0, b_pad - batch), (0, 0))).astype(jnp.bfloat16)
    w1_b = w1.astype(jnp.bfloat16)
    w2_b = jnp.pad(w2, ((0, 0), (0, out_pad - out_dim))).astype(jnp.bfloat16)
    b1_f = b1.reshape(1, hidden).astype(jnp.float32)
    b2_f = jnp.pad(b2.reshape(1, out_dim),
                   ((0, 0), (0, out_pad - out_dim))).astype(jnp.float32)

    grid = (b_pad // tile_b,)
    out = pl.pallas_call(
        mm_classifier_kernel,
        out_shape=jax.ShapeDtypeStruct((b_pad, out_pad), jnp.float32),
        grid_spec=pltpu.PrefetchScalarGridSpec(
            num_scalar_prefetch=0,
            grid=grid,
            in_specs=[
                pl.BlockSpec((tile_b, in_dim), lambda i: (i, 0)),    # x batch tile
                pl.BlockSpec((in_dim, hidden), lambda i: (0, 0)),    # w1 resident
                pl.BlockSpec((1, hidden), lambda i: (0, 0)),         # b1 resident
                pl.BlockSpec((hidden, out_pad), lambda i: (0, 0)),   # w2 resident
                pl.BlockSpec((1, out_pad), lambda i: (0, 0)),        # b2 resident
            ],
            out_specs=pl.BlockSpec((tile_b, out_pad), lambda i: (i, 0)),
        ),
        compiler_params=pltpu.CompilerParams(
            dimension_semantics=("parallel",),          # megacore batch split (v7x)
            vmem_limit_bytes=32 * 1024 * 1024,          # explicit budget (v7x-safe)
        ),
    )(x, w1_b, b1_f, w2_b, b2_f)

    return out[:batch, :out_dim]


def init_params(key, text_size, image_size, caption_size, hidden_size, output_size):
    """Deterministic synthetic parameter init (PyTorch nn.Linear-like uniform)."""
    input_size = text_size + image_size + caption_size
    k1, k2, k3, k4 = jax.random.split(key, 4)
    bound1 = 1.0 / jnp.sqrt(input_size)
    bound2 = 1.0 / jnp.sqrt(hidden_size)
    # Weights stored as [in_features, out_features] (x @ W == PyTorch x @ W.T).
    w1 = jax.random.uniform(k1, (input_size, hidden_size), jnp.float32, -bound1, bound1)
    b1 = jax.random.uniform(k2, (hidden_size,), jnp.float32, -bound1, bound1)
    w2 = jax.random.uniform(k3, (hidden_size, output_size), jnp.float32, -bound2, bound2)
    b2 = jax.random.uniform(k4, (output_size,), jnp.float32, -bound2, bound2)
    return (w1, b1, w2, b2)


def reference_forward(text_emb, image_emb, caption_emb, w1, b1, w2, b2):
    """Pure-JAX reference using the same bf16-operand / f32-accumulate path."""
    combined = jnp.concatenate([text_emb, image_emb, caption_emb],
                               axis=1).astype(jnp.bfloat16)
    h = jnp.dot(combined, w1.astype(jnp.bfloat16),
                preferred_element_type=jnp.float32) + b1
    h = jnp.maximum(h, 0.0)
    logits = jnp.dot(h.astype(jnp.bfloat16), w2.astype(jnp.bfloat16),
                     preferred_element_type=jnp.float32) + b2
    return jax.nn.sigmoid(logits)


if __name__ == "__main__":
    # Small shapes consistent with the module's forward.
    batch = 4
    text_size, image_size, caption_size = 16, 32, 16
    hidden_size, output_size = 32, 4

    key = jax.random.PRNGKey(0)
    kt, ki, kc, kp = jax.random.split(key, 4)
    text_emb = jax.random.normal(kt, (batch, text_size), jnp.float32)
    image_emb = jax.random.normal(ki, (batch, image_size), jnp.float32)
    caption_emb = jax.random.normal(kc, (batch, caption_size), jnp.float32)

    params = init_params(kp, text_size, image_size, caption_size,
                         hidden_size, output_size)

    out = multimodal_classifier_forward(text_emb, image_emb, caption_emb, params)
    out = jax.block_until_ready(out)

    ref = reference_forward(text_emb, image_emb, caption_emb, *params)
    assert out.shape == (batch, output_size)
    assert jnp.allclose(out, ref, atol=5e-3, rtol=5e-3), \
        float(jnp.max(jnp.abs(out - ref)))

    print("KERNEL_OK")
</pallas_src>

<mosaic_0001>
module attributes {stable_mosaic.version = 11 : i64} {
  func.func @mm_classifier_kernel(%arg0: i32, %arg1: memref<16x64xbf16, #tpu.memory_space<vmem>>, %arg2: memref<64x32xbf16, #tpu.memory_space<vmem>>, %arg3: memref<1x32xf32, #tpu.memory_space<vmem>>, %arg4: memref<32x128xbf16, #tpu.memory_space<vmem>>, %arg5: memref<1x128xf32, #tpu.memory_space<vmem>>, %arg6: memref<16x128xf32, #tpu.memory_space<vmem>>) attributes {dimension_semantics = [#tpu.dimension_semantics<parallel>], iteration_bounds = array<i64: 1>, scalar_prefetch = 0 : i64, scratch_operands = 0 : i64, tpu.core_type = #tpu.core_type<tc>, window_params = [{transform_indices = @transform_0, window_bounds = array<i64: 16, 64>}, {pipeline_mode = #tpu.pipeline_mode<synchronous>, transform_indices = @transform_1, window_bounds = array<i64: 64, 32>}, {pipeline_mode = #tpu.pipeline_mode<synchronous>, transform_indices = @transform_2, window_bounds = array<i64: 1, 32>}, {pipeline_mode = #tpu.pipeline_mode<synchronous>, transform_indices = @transform_3, window_bounds = array<i64: 32, 128>}, {pipeline_mode = #tpu.pipeline_mode<synchronous>, transform_indices = @transform_4, window_bounds = array<i64: 1, 128>}, {transform_indices = @transform_5, window_bounds = array<i64: 16, 128>}]} {
    %c0 = arith.constant 0 : index
    %c0_0 = arith.constant 0 : index
    %0 = vector.load %arg1[%c0, %c0_0] : memref<16x64xbf16, #tpu.memory_space<vmem>>, vector<16x64xbf16>
    %c0_1 = arith.constant 0 : index
    %c0_2 = arith.constant 0 : index
    %1 = vector.load %arg2[%c0_1, %c0_2] : memref<64x32xbf16, #tpu.memory_space<vmem>>, vector<64x32xbf16>
    %cst = arith.constant dense<0.000000e+00> : vector<16x32xf32>
    %2 = tpu.matmul %0, %1, %cst {dimension_numbers = #tpu.dot_dimension_numbers<[1], [0], [0], [1], [0, 0, 1, 1], [], []>} : vector<16x64xbf16>, vector<64x32xbf16>, vector<16x32xf32> -> vector<16x32xf32>
    %c0_3 = arith.constant 0 : index
    %c0_4 = arith.constant 0 : index
    %3 = vector.load %arg3[%c0_3, %c0_4] : memref<1x32xf32, #tpu.memory_space<vmem>>, vector<1x32xf32>
    %4 = vector.broadcast %3 : vector<1x32xf32> to vector<16x32xf32>
    %5 = arith.addf %2, %4 : vector<16x32xf32>
    %cst_5 = arith.constant 0.000000e+00 : f32
    %6 = vector.broadcast %cst_5 : f32 to vector<16x32xf32>
    %7 = arith.maximumf %5, %6 : vector<16x32xf32>
    %8 = arith.truncf %7 : vector<16x32xf32> to vector<16x32xbf16>
    %c0_6 = arith.constant 0 : index
    %c0_7 = arith.constant 0 : index
    %9 = vector.load %arg4[%c0_6, %c0_7] : memref<32x128xbf16, #tpu.memory_space<vmem>>, vector<32x128xbf16>
    %cst_8 = arith.constant dense<0.000000e+00> : vector<16x128xf32>
    %10 = tpu.matmul %8, %9, %cst_8 {dimension_numbers = #tpu.dot_dimension_numbers<[1], [0], [0], [1], [0, 0, 1, 1], [], []>} : vector<16x32xbf16>, vector<32x128xbf16>, vector<16x128xf32> -> vector<16x128xf32>
    %c0_9 = arith.constant 0 : index
    %c0_10 = arith.constant 0 : index
    %11 = vector.load %arg5[%c0_9, %c0_10] : memref<1x128xf32, #tpu.memory_space<vmem>>, vector<1x128xf32>
    %12 = vector.broadcast %11 : vector<1x128xf32> to vector<16x128xf32>
    %13 = arith.addf %10, %12 : vector<16x128xf32>
    %cst_11 = arith.constant 0.000000e+00 : f32
    %14 = vector.broadcast %cst_11 : f32 to vector<16x128xf32>
    %15 = arith.subf %14, %13 : vector<16x128xf32>
    %16 = math.exp %15 : vector<16x128xf32>
    %cst_12 = arith.constant 1.000000e+00 : f32
    %17 = vector.broadcast %cst_12 : f32 to vector<16x128xf32>
    %18 = arith.addf %17, %16 : vector<16x128xf32>
    %19 = tpu.reciprocal %18 {approx = true} : vector<16x128xf32> -> vector<16x128xf32>
    %c0_13 = arith.constant 0 : index
    %c0_14 = arith.constant 0 : index
    %20 = vector.load %arg6[%c0_13, %c0_14] : memref<16x128xf32, #tpu.memory_space<vmem>>, vector<16x128xf32>
    tpu.vector_store %arg6[%c0_13, %c0_14], %19 {strides = array<i32>} : memref<16x128xf32, #tpu.memory_space<vmem>>, vector<16x128xf32>,
    return
  }
  func.func @transform_0(%arg0: i32) -> (i32, i32) {
    %c0_i32 = arith.constant 0 : i32
    %c0_i32_0 = arith.constant 0 : i32
    return %arg0, %c0_i32 : i32, i32
  }
  func.func @transform_1(%arg0: i32) -> (i32, i32) {
    %c0_i32 = arith.constant 0 : i32
    %c0_i32_0 = arith.constant 0 : i32
    %c0_i32_1 = arith.constant 0 : i32
    return %c0_i32, %c0_i32_0 : i32, i32
  }
  func.func @transform_2(%arg0: i32) -> (i32, i32) {
    %c0_i32 = arith.constant 0 : i32
    %c0_i32_0 = arith.constant 0 : i32
    %c0_i32_1 = arith.constant 0 : i32
    return %c0_i32, %c0_i32_0 : i32, i32
  }
  func.func @transform_3(%arg0: i32) -> (i32, i32) {
    %c0_i32 = arith.constant 0 : i32
    %c0_i32_0 = arith.constant 0 : i32
    %c0_i32_1 = arith.constant 0 : i32
    return %c0_i32, %c0_i32_0 : i32, i32
  }
  func.func @transform_4(%arg0: i32) -> (i32, i32) {
    %c0_i32 = arith.constant 0 : i32
    %c0_i32_0 = arith.constant 0 : i32
    %c0_i32_1 = arith.constant 0 : i32
    return %c0_i32, %c0_i32_0 : i32, i32
  }
  func.func @transform_5(%arg0: i32) -> (i32, i32) {
    %c0_i32 = arith.constant 0 : i32
    %c0_i32_0 = arith.constant 0 : i32
    return %arg0, %c0_i32 : i32, i32
  }
}

</mosaic_0001>

<bundles_post_ra>
// kernel: tpu_custom_call.1
= control target key start
LH: loop header
LB: loop body
LE: loop exit
PB: predicated region body
PF: predicated region fallthrough
CT: control target
= control target key end

     0   :  { %v295_v1 = vmov 0.0   ;;  %vm296_vm0 = vmmov 0   ;;  %s369_s0 = inlined_call_operand.vmem [shape: bf16[16,64], index: 0, kind: input, shape index: {}]   ;;  %s370_s1 = inlined_call_operand.vmem [shape: bf16[64,32], index: 1, kind: input, shape index: {}]   ;;  %s371_s2 = inlined_call_operand.vmem [shape: f32[1,32], index: 2, kind: input, shape index: {}]   ;;  %s372_s3 = inlined_call_operand.vmem [shape: bf16[32,128], index: 3, kind: input, shape index: {}]   ;;  %s373_s4 = inlined_call_operand.vmem [shape: f32[1,128], index: 4, kind: input, shape index: {}]   ;;  %s374_s5 = inlined_call_operand.hbm [shape: f32[16,128], index: 5, kind: output, shape index: {}]  }
   0x1   :  { %v256_v0 = vld [vmem:[%s370_s1] sm:$0xff]   ;;  %231 = vmatprep.subr.bf16.mxu0 %v295_v1  ;;  %243 = vmatprep.subr.bf16.mxu1 %v295_v1  ;;  %v257_v2 = vld [vmem:[%s370_s1 + $0x8] sm:$0xff]   ;;  %v258_v3 = vld [vmem:[%s370_s1 + $0x10] sm:$0xff]  }
   0x2   :  { %232 = vmatpush3.bf16.msra.mxu0 %v256_v0  ;;  %239 = vmatprep.mubr.msk.bf16.mxu0 %vm296_vm0, %v295_v1 }
   0x3   :  { %233 = vmatprep.subr.bf16.mxu0 %v295_v1  ;;  %247 = vmatprep.mubr.msk.bf16.mxu1 %vm296_vm0, %v295_v1 }
   0x6   :  { %234 = vmatpush3.bf16.msra.mxu0 %v257_v2 }
   0x7   :  { %10 = vsyncpa [#allocation3], 0  ;;  %235 = vmatprep.subr.bf16.mxu0 %v295_v1  ;;  %v259_v4 = vld [vmem:[%s370_s1 + $0x18] sm:$0xff]   ;;  %v260_v5 = vld [vmem:[%s369_s0] sm:$0xff]   ;;  %vm68_vm1 = vcmask 523264   ;;  %vm139_vm2 = vcmask 261120  }
   0x8   :  { %v261_v6 = vld [vmem:[%s372_s3] sm:$0xff]   ;;  %v262_v7 = vld [vmem:[%s372_s3 + $0x8] sm:$0xff]  }
   0x9   :  { %244 = vmatpush3.bf16.msra.mxu1 %v261_v6  ;;  %v212_v8 = vld [vmem:[%s371_s2] ss:$0 sm:$0xff]  ;;  %s297_s2 = smov [#allocation2]  }
   0xa   :  { %236 = vmatpush3.bf16.msra.mxu0 %v258_v3  ;;  %245 = vmatprep.subr.bf16.mxu1 %v295_v1  ;;  %v219_v18 = vld [vmem:[%s373_s4] ss:$0 sm:$0xff]  ;;  %s201_s3 = sshll.u32 %s297_s2, 4  ;;  %s202_s3 = int_to_ptr.vmem [resolvable:$true] %s201_s3 }
   0xb   :  { %237 = vmatprep.subr.bf16.mxu0 %v295_v1  ;;  %s271_s4 = scalar_lea.vmem %s202_s3, 256  ;;  %p276_p1 = scmp.lt.s32.totalorder %s202_s3, %s202_s3 }
   0xc   :  { %p272_p0 = scmp.ne.s32.totalorder %s202_s3, %s271_s4  ;;  %p277_p2 = scmp.lt.s32.totalorder %s271_s4, %s271_s4 }
   0xd   :  { %246 = vmatpush3.bf16.msra.mxu1 %v262_v7 }
   0xe   :  { %238 = vmatpush3.bf16.msra.mxu0 %v259_v4  ;;  %p278_p3 = por %p277_p2, %p276_p1 }
  0x10   :  { %p279_p4 = pnand %p278_p3, %p272_p0 }
  0x11   :  { %240 = vmatmul.mubr.msk.bf16.vlgmr.msra.gmra.mrb[0].mxu0 %vm68_vm1, %v260_v5 }
  0xe4   :  { %v106_v9 = vpop.f32.mrb[0].mxu0 }
  0xe5   :  { %v107_v10 = vadd.f32 %v212_v8, %v106_v9  ;;  %v241_v11 = vpop.f32.mrb[1].mxu0 }
  0xe6   :  { %v109_v12 = vpop.f32.mrb[2].mxu0 }
  0xe7   :  { %v110_v13 = vadd.f32 %v212_v8, %v109_v12  ;;  %v242_v14 = vpop.f32.mrb[3].mxu0  ;;  %v113_v15 = vmax.f32 %v107_v10, 0.0 }
  0xe9   :  { %v114_v16 = vmax.f32 %v110_v13, 0.0 }
  0xeb   :  { %v115_v17 = vpack.c.bf16 %v114_v16, %v113_v15 }
  0xed   :  { %248 = vmatmul.mubr.msk.bf16.vlgmr.msra.gmra.mrb[0].mxu1 %vm139_vm2, %v115_v17 }
 0x1c0   :  { %v177_v19 = vpop.f32.mrb[0].mxu1 }
 0x1c1   :  { %v178_v20 = vadd.f32 %v219_v18, %v177_v19  ;;  %v249_v21 = vpop.f32.mrb[1].mxu1 }
 0x1c2   :  { %v180_v22 = vpop.f32.mrb[2].mxu1 }
 0x1c3   :  { %v184_v23 = vsub.f32 0.0, %v178_v20  ;;  %v181_v24 = vadd.f32 %v219_v18, %v180_v22  ;;  %v250_v25 = vpop.f32.mrb[3].mxu1 }
 0x1c5   :  { %v186_v26 = vmul.f32 1.442695, %v184_v23  ;;  %v185_v27 = vsub.f32 0.0, %v181_v24 }
 0x1c7   :  { %263 = vpow2.f32 %v186_v26  ;;  %v188_v28 = vmul.f32 1.442695, %v185_v27 }
 0x1c9   :  { %265 = vpow2.f32 %v188_v28 }
 0x1d1   :  { %v264_v29 = vpop.eup %263 }
 0x1d2   :  { %v190_v30 = vadd.f32 1.0, %v264_v29 }
 0x1d3   :  { %v266_v31 = vpop.eup %265 }
 0x1d4   :  { %267 = vrcp.f32 %v190_v30  ;;  %v191_v32 = vadd.f32 1.0, %v266_v31 }
 0x1d6   :  { %269 = vrcp.f32 %v191_v32 }
 0x1de   :  { %v268_v33 = vpop.eup %267 }
 0x1df   :  { %194 = vst [vmem:[#allocation2] sm:$0xff] %v268_v33 }
 0x1e0   :  { %v270_v34 = vpop.eup %269 }
 0x1e1   :  { %195 = vst [vmem:[#allocation2 + $0x8] sm:$0xff] %v270_v34 }
 0x1e2   :  { %282 = shalt.err (!%p279_p4)
}
 0x1e3   :  { %s283_s11 = scalar_lea.hbm %s374_s5, 256 }
 0x1e4   :  { %p284_p5 = scmp.ne.s32.totalorder %s374_s5, %s283_s11  ;;  %p287_p6 = scmp.lt.u32.totalorder %s283_s11, %s374_s5 }
 0x1e6   :  { %p289_p7 = pnand %p287_p6, %p284_p5 }
 0x1e8   :  { %292 = shalt.err (!%p289_p7)
}
 0x1e9   :  { %s298_s16 = smov 128   ;;  %s299_s17 = smov 8  }
 0x1ea   :  { %207 = dma.vmem_to_hbm [thread:$0]  %s202_s3, 256, %s374_s5, [#allocation3], %s298_s16, %s298_s16, %s299_s17  }
 0x1eb   :  { %293 = dma.done.wait [#allocation3], 256  }
 0x1ec   :  { %294 = vsyncadd [#allocation3], 4294967040 }
 0x1ed   :  { %211 = vsyncpa [#allocation3], 1 }

</bundles_post_ra>
